<compile_context>
chip_gen: v5e
topology: v5e:2x2
jax: 0.10.0
libtpu: 0.0.40
codegen_flags: <defaults>
</compile_context>

<pallas_src>
import math

import jax
import jax.numpy as jnp
from jax.experimental import pallas as pl
from jax.experimental.pallas import tpu as pltpu

IN_FEATURES = 65          # 51 coords + 14 angles
PAD = 128                 # lane width used for the MXU matmuls
SUBLANE = 8               # sublane granularity for batch rows
TM_MAX = 2048             # max batch-tile rows (x tile = 512 KiB bf16)

RAD2DEG = 180.0 / math.pi


def _round_up(x, m):
    return (x + m - 1) // m * m


# ----------------------------------------------------------------------------
# Angle computation (plain JAX glue — tiny, static joint gathers)
# ----------------------------------------------------------------------------
def _transform_pose(pose_b173):
    """pose (B,17,3) [x,y,z] -> (B,3,17) rows = [x, z, -y] (XZY->XYZ, flip Z)."""
    x = pose_b173[..., 0]
    y = pose_b173[..., 1]
    z = pose_b173[..., 2]
    return jnp.stack([x, z, -y], axis=1)  # (B, 3, 17)


def _angle_between(u, v):
    """Angle in degrees between batched 3-vectors u, v of shape (B, 3)."""
    cos = jnp.sum(u * v, axis=-1) / (
        jnp.linalg.norm(u, axis=-1) * jnp.linalg.norm(v, axis=-1)
    )
    cos = jnp.clip(cos, -1.0, 1.0)
    return jnp.arccos(cos) * RAD2DEG


def _calc_z(p, j1, j2):
    """Angle between (joint1 - joint2) and the +Z axis, degrees. p: (B,3,17)."""
    ba = p[:, :, j1] - p[:, :, j2]
    cos = ba[:, 2] / jnp.linalg.norm(ba, axis=-1)
    cos = jnp.clip(cos, -1.0, 1.0)
    return jnp.arccos(cos) * RAD2DEG


def _calc_angle(p, j1, j2, j3):
    ba = p[:, :, j1] - p[:, :, j2]
    bc = p[:, :, j3] - p[:, :, j2]
    return _angle_between(ba, bc)


def _calc_twist(p, j1, j2, j3, j4):
    ba = p[:, :, j1] - p[:, :, j2]
    dc = p[:, :, j4] - p[:, :, j3]
    return _angle_between(ba, dc)


def accumulate_frames_angles(pose_b173):
    """Returns (B, 14) angle features, matching the PyTorch ordering."""
    p = _transform_pose(pose_b173)
    angles = [
        _calc_z(p, 11, 12) - 10.0,
        _calc_angle(p, 12, 11, 14),
        _calc_z(p, 14, 15) - 10.0,
        _calc_angle(p, 15, 14, 11),
        180.0 - _calc_angle(p, 13, 12, 11),
        180.0 - _calc_angle(p, 14, 15, 16),
        180.0 - _calc_angle(p, 4, 5, 6),
        180.0 - _calc_angle(p, 1, 2, 3),
        180.0 - _calc_z(p, 0, 8),
        _calc_twist(p, 1, 4, 11, 14),
        _calc_twist(p, 1, 4, 0, 7),
        180.0 - _calc_z(p, 8, 10),
        _calc_twist(p, 11, 14, 8, 10),
        _calc_twist(p, 11, 14, 9, 10),
    ]
    return jnp.stack(angles, axis=1)  # (B, 14)


# ----------------------------------------------------------------------------
# Pallas MLP kernel (hot path: 4 matmuls + LeakyReLU + Sigmoid)
# ----------------------------------------------------------------------------
def _leaky_relu(h, slope=0.2):
    return jnp.where(h >= 0, h, slope * h)


def mlp_kernel(x_ref, w1_ref, b1_ref, w2_ref, b2_ref, w3_ref, b3_ref,
               w4_ref, b4_ref, o_ref):
    # x arrives lane-full: (TM, 128) bf16, pad lanes are explicit zeros
    # (padded in the wrapper — no VMEM scratch, no masked partial stores).

    # Layer 1: (TM,128) x (128,128); K/N padding hits zero weight rows/cols.
    h = jnp.dot(x_ref[...], w1_ref[...], preferred_element_type=jnp.float32)
    h = _leaky_relu(h + b1_ref[...])

    # Layer 2: (TM,128) x (128,128); output cols 64.. stay exactly zero.
    h = jnp.dot(h.astype(jnp.bfloat16), w2_ref[...],
                preferred_element_type=jnp.float32)
    h = _leaky_relu(h + b2_ref[...])

    # Layer 3: w3 zero-padded to (128,128) -> no sub-vreg lane slice needed.
    h = jnp.dot(h.astype(jnp.bfloat16), w3_ref[...],
                preferred_element_type=jnp.float32)
    h = _leaky_relu(h + b3_ref[...])

    # Layer 4: contract the w4 row block against h so the batch lands on the
    # lane axis -> lane-dense (1, TM) result, one unmasked store per tile.
    # w4_ref is (8,128) bf16 with only row 0 live (rows 1..7 are zero).
    h4 = jax.lax.dot_general(
        w4_ref[...], h.astype(jnp.bfloat16),
        dimension_numbers=(((1,), (1,)), ((), ())),
        preferred_element_type=jnp.float32)           # (8, TM)
    h4 = h4[0:1, :] + b4_ref[0:1, 0:1]                # (1, TM), scalar bias bcast
    tm = o_ref.shape[-1]
    o_ref[...] = jax.nn.sigmoid(h4).reshape(1, 1, tm)


# ----------------------------------------------------------------------------
# One-time parameter preparation (hoisted out of the per-call forward path)
# ----------------------------------------------------------------------------
def prepare_params(params):
    """Zero-pad weights/biases to MXU-friendly shapes; cast matmul operands
    to bf16 (biases / elementwise math stay f32)."""
    (w1, b1), (w2, b2), (w3, b3), (w4, b4) = params

    def pad_w(w):
        out = jnp.zeros((PAD, PAD), jnp.float32)
        out = out.at[: w.shape[0], : w.shape[1]].set(w.astype(jnp.float32))
        return out.astype(jnp.bfloat16)

    def pad_b(bvec):
        out = jnp.zeros((1, PAD), jnp.float32)
        return out.at[0, : bvec.shape[0]].set(bvec.astype(jnp.float32))

    # Layer-4 weight column (32,1) -> (8,128) row block; only row 0 is live.
    w4row = jnp.zeros((SUBLANE, PAD), jnp.float32)
    w4row = w4row.at[0, : w4.shape[0]].set(w4[:, 0].astype(jnp.float32))

    return (pad_w(w1), pad_b(b1),
            pad_w(w2), pad_b(b2),
            pad_w(w3), pad_b(b3),
            w4row.astype(jnp.bfloat16), pad_b(b4))


# ----------------------------------------------------------------------------
# Forward wrapper
# ----------------------------------------------------------------------------
def _pick_tm(b):
    """Large tile to amortize per-step overhead, but >= 2 grid steps whenever
    the batch allows it (so v7x's two TensorCores both get work)."""
    half = -(-b // 2)                                   # cdiv(b, 2)
    tm = _round_up(max(half, SUBLANE), SUBLANE)
    return min(TM_MAX, tm)


@jax.jit
def pose_discriminator_forward(batch_frames, prepared):
    """batch_frames: (B, 51) float32 -> validity (B, 1) float32."""
    b = batch_frames.shape[0]
    reshaped = batch_frames.reshape(-1, 17, 3)
    angles = accumulate_frames_angles(reshaped)                 # (B, 14) f32
    flat = reshaped.reshape(b, -1)                              # (B, 51)
    enriched = jnp.concatenate([flat, angles], axis=1)          # (B, 65)

    tm = _pick_tm(b)
    b_pad = _round_up(b, tm)
    grid = b_pad // tm

    # Pad batch rows and lanes (explicit zeros) and cast to bf16 in one shot:
    # the kernel tile arrives lane-full, so no in-kernel pad scratch is needed.
    x = jnp.pad(enriched,
                ((0, b_pad - b), (0, PAD - IN_FEATURES))).astype(jnp.bfloat16)

    w1p, b1p, w2p, b2p, w3p, b3p, w4p, b4p = prepared

    def resident(shape):  # weights/biases: same block index on every grid step
        return pl.BlockSpec(shape, lambda i: (0, 0))

    out = pl.pallas_call(
        mlp_kernel,
        out_shape=jax.ShapeDtypeStruct((grid, 1, tm), jnp.float32),
        grid_spec=pltpu.PrefetchScalarGridSpec(
            num_scalar_prefetch=0,
            grid=(grid,),
            in_specs=[
                pl.BlockSpec((tm, PAD), lambda i: (i, 0)),        # x tile
                resident((PAD, PAD)), resident((1, PAD)),         # w1, b1
                resident((PAD, PAD)), resident((1, PAD)),         # w2, b2
                resident((PAD, PAD)), resident((1, PAD)),         # w3, b3
                resident((SUBLANE, PAD)), resident((1, PAD)),     # w4 row, b4
            ],
            out_specs=pl.BlockSpec((1, 1, tm), lambda i: (i, 0, 0)),
        ),
        compiler_params=pltpu.CompilerParams(
            dimension_semantics=("parallel",),       # v7x: shard over both TCs
            vmem_limit_bytes=32 * 1024 * 1024,
        ),
    )(x, w1p, b1p, w2p, b2p, w3p, b3p, w4p, b4p)

    return out.reshape(b_pad, 1)[:b]


# ----------------------------------------------------------------------------
# Pure-JAX reference (same bf16 quantization points as the kernel path)
# ----------------------------------------------------------------------------
def reference_forward(batch_frames, params):
    b = batch_frames.shape[0]
    reshaped = batch_frames.reshape(-1, 17, 3)
    angles = accumulate_frames_angles(reshaped)
    flat = reshaped.reshape(b, -1)
    h = jnp.concatenate([flat, angles], axis=1)
    h = h.astype(jnp.bfloat16).astype(jnp.float32)
    for idx, (w, bias) in enumerate(params):
        wq = w.astype(jnp.bfloat16).astype(jnp.float32)
        h = h @ wq + bias
        if idx < 3:
            h = jnp.where(h >= 0, h, 0.2 * h)
            h = h.astype(jnp.bfloat16).astype(jnp.float32)
        else:
            h = jax.nn.sigmoid(h)
    return h


# ----------------------------------------------------------------------------
# Deterministic parameter init (PyTorch nn.Linear-style uniform)
# ----------------------------------------------------------------------------
def init_params(key):
    dims = [(65, 128), (128, 64), (64, 32), (32, 1)]
    params = []
    for (fin, fout) in dims:
        key, kw, kb = jax.random.split(key, 3)
        bound = 1.0 / math.sqrt(fin)
        w = jax.random.uniform(kw, (fin, fout), jnp.float32, -bound, bound)
        bvec = jax.random.uniform(kb, (fout,), jnp.float32, -bound, bound)
        params.append((w, bvec))
    return params


if __name__ == "__main__":
    key = jax.random.PRNGKey(0)
    k_in, k_par, k_in2 = jax.random.split(key, 3)

    params = init_params(k_par)
    prepared = prepare_params(params)          # one-time padding / bf16 cast

    # Small batch (single grid step).
    B = 2
    batch_frames = jax.random.normal(k_in, (B, 51), dtype=jnp.float32)
    validity = pose_discriminator_forward(batch_frames, prepared)
    jax.block_until_ready(validity)

    assert validity.shape == (B, 1), validity.shape
    assert bool(jnp.all(jnp.isfinite(validity)))
    assert bool(jnp.all((validity >= 0.0) & (validity <= 1.0)))
    ref = reference_forward(batch_frames, params)
    assert bool(jnp.max(jnp.abs(validity - ref)) < 1e-2), (
        float(jnp.max(jnp.abs(validity - ref))))

    # Mid-size batch: exercises the multi-step grid / megacore path.
    B2 = 300
    batch_frames2 = jax.random.normal(k_in2, (B2, 51), dtype=jnp.float32)
    validity2 = pose_discriminator_forward(batch_frames2, prepared)
    jax.block_until_ready(validity2)

    assert validity2.shape == (B2, 1), validity2.shape
    assert bool(jnp.all(jnp.isfinite(validity2)))
    ref2 = reference_forward(batch_frames2, params)
    assert bool(jnp.max(jnp.abs(validity2 - ref2)) < 1e-2), (
        float(jnp.max(jnp.abs(validity2 - ref2))))

    print("KERNEL_OK")
</pallas_src>

<mosaic_0001>
module attributes {stable_mosaic.version = 11 : i64} {
  func.func @mlp_kernel(%arg0: i32, %arg1: memref<8x128xbf16, #tpu.memory_space<vmem>>, %arg2: memref<128x128xbf16, #tpu.memory_space<vmem>>, %arg3: memref<1x128xf32, #tpu.memory_space<vmem>>, %arg4: memref<128x128xbf16, #tpu.memory_space<vmem>>, %arg5: memref<1x128xf32, #tpu.memory_space<vmem>>, %arg6: memref<128x128xbf16, #tpu.memory_space<vmem>>, %arg7: memref<1x128xf32, #tpu.memory_space<vmem>>, %arg8: memref<8x128xbf16, #tpu.memory_space<vmem>>, %arg9: memref<1x128xf32, #tpu.memory_space<vmem>>, %arg10: memref<1x1x8xf32, #tpu.memory_space<vmem>>) attributes {dimension_semantics = [#tpu.dimension_semantics<parallel>], iteration_bounds = array<i64: 1>, scalar_prefetch = 0 : i64, scratch_operands = 0 : i64, tpu.core_type = #tpu.core_type<tc>, window_params = [{transform_indices = @transform_0, window_bounds = array<i64: 8, 128>}, {pipeline_mode = #tpu.pipeline_mode<synchronous>, transform_indices = @transform_1, window_bounds = array<i64: 128, 128>}, {pipeline_mode = #tpu.pipeline_mode<synchronous>, transform_indices = @transform_2, window_bounds = array<i64: 1, 128>}, {pipeline_mode = #tpu.pipeline_mode<synchronous>, transform_indices = @transform_3, window_bounds = array<i64: 128, 128>}, {pipeline_mode = #tpu.pipeline_mode<synchronous>, transform_indices = @transform_4, window_bounds = array<i64: 1, 128>}, {pipeline_mode = #tpu.pipeline_mode<synchronous>, transform_indices = @transform_5, window_bounds = array<i64: 128, 128>}, {pipeline_mode = #tpu.pipeline_mode<synchronous>, transform_indices = @transform_6, window_bounds = array<i64: 1, 128>}, {pipeline_mode = #tpu.pipeline_mode<synchronous>, transform_indices = @transform_7, window_bounds = array<i64: 8, 128>}, {pipeline_mode = #tpu.pipeline_mode<synchronous>, transform_indices = @transform_8, window_bounds = array<i64: 1, 128>}, {transform_indices = @transform_9, window_bounds = array<i64: 1, 1, 8>}]} {
    %c0 = arith.constant 0 : index
    %c0_0 = arith.constant 0 : index
    %0 = vector.load %arg1[%c0, %c0_0] : memref<8x128xbf16, #tpu.memory_space<vmem>>, vector<8x128xbf16>
    %c0_1 = arith.constant 0 : index
    %c0_2 = arith.constant 0 : index
    %1 = vector.load %arg2[%c0_1, %c0_2] : memref<128x128xbf16, #tpu.memory_space<vmem>>, vector<128x128xbf16>
    %cst = arith.constant dense<0.000000e+00> : vector<8x128xf32>
    %2 = tpu.matmul %0, %1, %cst {dimension_numbers = #tpu.dot_dimension_numbers<[1], [0], [0], [1], [0, 0, 1, 1], [], []>} : vector<8x128xbf16>, vector<128x128xbf16>, vector<8x128xf32> -> vector<8x128xf32>
    %c0_3 = arith.constant 0 : index
    %c0_4 = arith.constant 0 : index
    %3 = vector.load %arg3[%c0_3, %c0_4] : memref<1x128xf32, #tpu.memory_space<vmem>>, vector<1x128xf32>
    %4 = vector.broadcast %3 : vector<1x128xf32> to vector<8x128xf32>
    %5 = arith.addf %2, %4 : vector<8x128xf32>
    %cst_5 = arith.constant 0.000000e+00 : f32
    %6 = vector.broadcast %cst_5 : f32 to vector<8x128xf32>
    %7 = arith.cmpf oge, %5, %6 : vector<8x128xf32>
    %cst_6 = arith.constant 2.000000e-01 : f32
    %8 = vector.broadcast %cst_6 : f32 to vector<8x128xf32>
    %9 = arith.mulf %8, %5 : vector<8x128xf32>
    %10 = arith.select %7, %5, %9 : vector<8x128xi1>, vector<8x128xf32>
    %11 = arith.truncf %10 : vector<8x128xf32> to vector<8x128xbf16>
    %c0_7 = arith.constant 0 : index
    %c0_8 = arith.constant 0 : index
    %12 = vector.load %arg4[%c0_7, %c0_8] : memref<128x128xbf16, #tpu.memory_space<vmem>>, vector<128x128xbf16>
    %cst_9 = arith.constant dense<0.000000e+00> : vector<8x128xf32>
    %13 = tpu.matmul %11, %12, %cst_9 {dimension_numbers = #tpu.dot_dimension_numbers<[1], [0], [0], [1], [0, 0, 1, 1], [], []>} : vector<8x128xbf16>, vector<128x128xbf16>, vector<8x128xf32> -> vector<8x128xf32>
    %c0_10 = arith.constant 0 : index
    %c0_11 = arith.constant 0 : index
    %14 = vector.load %arg5[%c0_10, %c0_11] : memref<1x128xf32, #tpu.memory_space<vmem>>, vector<1x128xf32>
    %15 = vector.broadcast %14 : vector<1x128xf32> to vector<8x128xf32>
    %16 = arith.addf %13, %15 : vector<8x128xf32>
    %cst_12 = arith.constant 0.000000e+00 : f32
    %17 = vector.broadcast %cst_12 : f32 to vector<8x128xf32>
    %18 = arith.cmpf oge, %16, %17 : vector<8x128xf32>
    %cst_13 = arith.constant 2.000000e-01 : f32
    %19 = vector.broadcast %cst_13 : f32 to vector<8x128xf32>
    %20 = arith.mulf %19, %16 : vector<8x128xf32>
    %21 = arith.select %18, %16, %20 : vector<8x128xi1>, vector<8x128xf32>
    %22 = arith.truncf %21 : vector<8x128xf32> to vector<8x128xbf16>
    %c0_14 = arith.constant 0 : index
    %c0_15 = arith.constant 0 : index
    %23 = vector.load %arg6[%c0_14, %c0_15] : memref<128x128xbf16, #tpu.memory_space<vmem>>, vector<128x128xbf16>
    %cst_16 = arith.constant dense<0.000000e+00> : vector<8x128xf32>
    %24 = tpu.matmul %22, %23, %cst_16 {dimension_numbers = #tpu.dot_dimension_numbers<[1], [0], [0], [1], [0, 0, 1, 1], [], []>} : vector<8x128xbf16>, vector<128x128xbf16>, vector<8x128xf32> -> vector<8x128xf32>
    %c0_17 = arith.constant 0 : index
    %c0_18 = arith.constant 0 : index
    %25 = vector.load %arg7[%c0_17, %c0_18] : memref<1x128xf32, #tpu.memory_space<vmem>>, vector<1x128xf32>
    %26 = vector.broadcast %25 : vector<1x128xf32> to vector<8x128xf32>
    %27 = arith.addf %24, %26 : vector<8x128xf32>
    %cst_19 = arith.constant 0.000000e+00 : f32
    %28 = vector.broadcast %cst_19 : f32 to vector<8x128xf32>
    %29 = arith.cmpf oge, %27, %28 : vector<8x128xf32>
    %cst_20 = arith.constant 2.000000e-01 : f32
    %30 = vector.broadcast %cst_20 : f32 to vector<8x128xf32>
    %31 = arith.mulf %30, %27 : vector<8x128xf32>
    %32 = arith.select %29, %27, %31 : vector<8x128xi1>, vector<8x128xf32>
    %c0_21 = arith.constant 0 : index
    %c0_22 = arith.constant 0 : index
    %33 = vector.load %arg8[%c0_21, %c0_22] : memref<8x128xbf16, #tpu.memory_space<vmem>>, vector<8x128xbf16>
    %34 = arith.truncf %32 : vector<8x128xf32> to vector<8x128xbf16>
    %cst_23 = arith.constant dense<0.000000e+00> : vector<8x8xf32>
    %35 = tpu.matmul %33, %34, %cst_23 {dimension_numbers = #tpu.dot_dimension_numbers<[1], [1], [0], [0], [0, 0, 1, 0], [], []>} : vector<8x128xbf16>, vector<8x128xbf16>, vector<8x8xf32> -> vector<8x8xf32>
    %36 = vector.extract_strided_slice %35 {offsets = [0, 0], sizes = [1, 8], strides = [1, 1]} : vector<8x8xf32> to vector<1x8xf32>
    %c0_24 = arith.constant 0 : index
    %c0_25 = arith.constant 0 : index
    %37 = vector.load %arg9[%c0_24, %c0_25] : memref<1x128xf32, #tpu.memory_space<vmem>>, vector<1x1xf32>
    %38 = vector.broadcast %37 : vector<1x1xf32> to vector<1x8xf32>
    %39 = arith.addf %36, %38 : vector<1x8xf32>
    %40 = arith.negf %39 : vector<1x8xf32>
    %41 = math.exp %40 : vector<1x8xf32>
    %cst_26 = arith.constant 1.000000e+00 : f32
    %42 = vector.broadcast %cst_26 : f32 to vector<1x8xf32>
    %43 = arith.addf %42, %41 : vector<1x8xf32>
    %44 = arith.divf %42, %43 : vector<1x8xf32>
    %45 = vector.shape_cast %44 : vector<1x8xf32> to vector<1x1x8xf32>
    %c0_27 = arith.constant 0 : index
    %c0_28 = arith.constant 0 : index
    %c0_29 = arith.constant 0 : index
    %46 = vector.load %arg10[%c0_27, %c0_28, %c0_29] : memref<1x1x8xf32, #tpu.memory_space<vmem>>, vector<1x1x8xf32>
    tpu.vector_store %arg10[%c0_27, %c0_28, %c0_29], %45 {strides = array<i32>} : memref<1x1x8xf32, #tpu.memory_space<vmem>>, vector<1x1x8xf32>,
    return
  }
  func.func @transform_0(%arg0: i32) -> (i32, i32) {
    %c0_i32 = arith.constant 0 : i32
    %c0_i32_0 = arith.constant 0 : i32
    return %arg0, %c0_i32 : i32, i32
  }
  func.func @transform_1(%arg0: i32) -> (i32, i32) {
    %c0_i32 = arith.constant 0 : i32
    %c0_i32_0 = arith.constant 0 : i32
    %c0_i32_1 = arith.constant 0 : i32
    return %c0_i32, %c0_i32_0 : i32, i32
  }
  func.func @transform_2(%arg0: i32) -> (i32, i32) {
    %c0_i32 = arith.constant 0 : i32
    %c0_i32_0 = arith.constant 0 : i32
    %c0_i32_1 = arith.constant 0 : i32
    return %c0_i32, %c0_i32_0 : i32, i32
  }
  func.func @transform_3(%arg0: i32) -> (i32, i32) {
    %c0_i32 = arith.constant 0 : i32
    %c0_i32_0 = arith.constant 0 : i32
    %c0_i32_1 = arith.constant 0 : i32
    return %c0_i32, %c0_i32_0 : i32, i32
  }
  func.func @transform_4(%arg0: i32) -> (i32, i32) {
    %c0_i32 = arith.constant 0 : i32
    %c0_i32_0 = arith.constant 0 : i32
    %c0_i32_1 = arith.constant 0 : i32
    return %c0_i32, %c0_i32_0 : i32, i32
  }
  func.func @transform_5(%arg0: i32) -> (i32, i32) {
    %c0_i32 = arith.constant 0 : i32
    %c0_i32_0 = arith.constant 0 : i32
    %c0_i32_1 = arith.constant 0 : i32
    return %c0_i32, %c0_i32_0 : i32, i32
  }
  func.func @transform_6(%arg0: i32) -> (i32, i32) {
    %c0_i32 = arith.constant 0 : i32
    %c0_i32_0 = arith.constant 0 : i32
    %c0_i32_1 = arith.constant 0 : i32
    return %c0_i32, %c0_i32_0 : i32, i32
  }
  func.func @transform_7(%arg0: i32) -> (i32, i32) {
    %c0_i32 = arith.constant 0 : i32
    %c0_i32_0 = arith.constant 0 : i32
    %c0_i32_1 = arith.constant 0 : i32
    return %c0_i32, %c0_i32_0 : i32, i32
  }
  func.func @transform_8(%arg0: i32) -> (i32, i32) {
    %c0_i32 = arith.constant 0 : i32
    %c0_i32_0 = arith.constant 0 : i32
    %c0_i32_1 = arith.constant 0 : i32
    return %c0_i32, %c0_i32_0 : i32, i32
  }
  func.func @transform_9(%arg0: i32) -> (i32, i32, i32) {
    %c0_i32 = arith.constant 0 : i32
    %c0_i32_0 = arith.constant 0 : i32
    %c0_i32_1 = arith.constant 0 : i32
    return %arg0, %c0_i32, %c0_i32_0 : i32, i32, i32
  }
}

</mosaic_0001>

<bundles_post_ra>
// kernel: pose_discriminator_forward.1
= control target key start
LH: loop header
LB: loop body
LE: loop exit
PB: predicated region body
PF: predicated region fallthrough
CT: control target
= control target key end

     0   :  { %v466_v40 = vmov 0   ;;  %vm330_vm6 = vcmask 57344   ;;  %s610_s1 = inlined_call_operand.vmem [shape: bf16[128,128], index: 1, kind: input, shape index: {}]   ;;  %s611_s3 = inlined_call_operand.vmem [shape: bf16[128,128], index: 3, kind: input, shape index: {}]   ;;  %s612_s2 = inlined_call_operand.vmem [shape: f32[1,128], index: 2, kind: input, shape index: {}]   ;;  %s613_s0 = inlined_call_operand.vmem [shape: bf16[8,128], index: 0, kind: input, shape index: {}]   ;;  %s614_s4 = inlined_call_operand.vmem [shape: f32[1,128], index: 4, kind: input, shape index: {}]   ;;  %s615_s5 = inlined_call_operand.vmem [shape: bf16[128,128], index: 5, kind: input, shape index: {}]   ;;  %s616_s6 = inlined_call_operand.vmem [shape: f32[1,128], index: 6, kind: input, shape index: {}]   ;;  %s617_s8 = inlined_call_operand.vmem [shape: f32[1,128], index: 8, kind: input, shape index: {}]   ;;  %s618_s7 = inlined_call_operand.vmem [shape: bf16[8,128], index: 7, kind: input, shape index: {}]   ;;  %s619_s9 = inlined_call_operand.vmem [shape: f32[1,1,8], index: 9, kind: output, shape index: {}]  }
   0x1   :  { %v440_v0 = vld [vmem:[%s610_s1 + $0x38] sm:$0xff]  ;;  %v439_v1 = vld [vmem:[%s610_s1 + $0x30] sm:$0xff]  ;;  %v438_v4 = vld [vmem:[%s610_s1 + $0x28] sm:$0xff]  ;;  %458 = vset.pattern.permute.xlu0 %v466_v40 }
   0x2   :  { %102 = vmatpush.bf16.msra.mxu0 %v440_v0  ;;  %v448_v2 = vld [vmem:[%s611_s3 + $0x38] sm:$0xff]  ;;  %v447_v3 = vld [vmem:[%s611_s3 + $0x30] sm:$0xff]  ;;  %v446_v5 = vld [vmem:[%s611_s3 + $0x28] sm:$0xff] }
   0x3   :  { %187 = vmatpush.bf16.msra.mxu1 %v448_v2  ;;  %v437_v6 = vld [vmem:[%s610_s1 + $0x20] sm:$0xff]  ;;  %v436_v8 = vld [vmem:[%s610_s1 + $0x18] sm:$0xff]  ;;  %v435_v10 = vld [vmem:[%s610_s1 + $0x10] sm:$0xff] }
   0x4   :  { %v445_v7 = vld [vmem:[%s611_s3 + $0x20] sm:$0xff]  ;;  %v444_v9 = vld [vmem:[%s611_s3 + $0x18] sm:$0xff]  ;;  %v443_v11 = vld [vmem:[%s611_s3 + $0x10] sm:$0xff] }
   0x5   :  { %v434_v12 = vld [vmem:[%s610_s1 + $0x8] sm:$0xff]  ;;  %v433_v13 = vld [vmem:[%s610_s1] sm:$0xff]  ;;  %v456_v17 = vld [vmem:[%s615_s5 + $0x38] sm:$0xff] }
   0x6   :  { %103 = vmatpush.bf16.msra.mxu0 %v439_v1  ;;  %v33_v14 = vld [vmem:[%s613_s0] sm:$0xf]  ;;  %v442_v15 = vld [vmem:[%s611_s3 + $0x8] sm:$0xff]  ;;  %272 = vmatpush.bf16.msra.mxu2 %v456_v17  ;;  %v455_v18 = vld [vmem:[%s615_s5 + $0x30] sm:$0xff] }
   0x7   :  { %188 = vmatpush.bf16.msra.mxu1 %v447_v3  ;;  %v441_v16 = vld [vmem:[%s611_s3] sm:$0xff]  ;;  %v454_v19 = vld [vmem:[%s615_s5 + $0x28] sm:$0xff]  ;;  %v452_v21 = vld [vmem:[%s615_s5 + $0x18] sm:$0xff] }
   0x8   :  { %v453_v20 = vld [vmem:[%s615_s5 + $0x20] sm:$0xff]  ;;  %v451_v22 = vld [vmem:[%s615_s5 + $0x10] sm:$0xff]  ;;  %v450_v30 = vld [vmem:[%s615_s5 + $0x8] sm:$0xff] }
   0x9   :  { %v459_v23 = vld [vmem:[%s612_s2] ss:$0 sm:$0xff] }
   0xa   :  { %104 = vmatpush.bf16.msra.mxu0 %v438_v4  ;;  %273 = vmatpush.bf16.msra.mxu2 %v455_v18  ;;  %v449_v31 = vld [vmem:[%s615_s5] sm:$0xff] }
   0xb   :  { %189 = vmatpush.bf16.msra.mxu1 %v446_v5  ;;  %v460_v32 = vld [vmem:[%s614_s4] ss:$0 sm:$0xff] }
   0xc   :  { %v303_v39 = vld [vmem:[%s617_s8] sm:$0x1] }
   0xd   :  { %306 = vperm.xlu0 %458, %v303_v39   ;;  %v461_v41 = vld [vmem:[%s616_s6] ss:$0 sm:$0xff] }
   0xe   :  { %105 = vmatpush.bf16.msra.mxu0 %v437_v6  ;;  %274 = vmatpush.bf16.msra.mxu2 %v454_v19  ;;  %v288_v48 = vld [vmem:[%s618_s7] sm:$0xf] }
   0xf   :  { %190 = vmatpush.bf16.msra.mxu1 %v445_v7 }
  0x12   :  { %106 = vmatpush.bf16.msra.mxu0 %v436_v8  ;;  %275 = vmatpush.bf16.msra.mxu2 %v453_v20 }
  0x13   :  { %191 = vmatpush.bf16.msra.mxu1 %v444_v9 }
  0x16   :  { %107 = vmatpush.bf16.msra.mxu0 %v435_v10  ;;  %276 = vmatpush.bf16.msra.mxu2 %v452_v21 }
  0x17   :  { %192 = vmatpush.bf16.msra.mxu1 %v443_v11 }
  0x1a   :  { %108 = vmatpush.bf16.msra.mxu0 %v434_v12  ;;  %277 = vmatpush.bf16.msra.mxu2 %v451_v22 }
  0x1b   :  { %193 = vmatpush.bf16.msra.mxu1 %v442_v15 }
  0x1e   :  { %109 = vmatpush.bf16.msra.mxu0 %v433_v13  ;;  %278 = vmatpush.bf16.msra.mxu2 %v450_v30 }
  0x1f   :  { %194 = vmatpush.bf16.msra.mxu1 %v441_v16 }
  0x21   :  { %110 = vmatmul.bf16.vlgmr.msra.gmra.mxu0 %v33_v14 }
  0x22   :  { %279 = vmatpush.bf16.msra.mxu2 %v449_v31 }
  0x7f   :  { %v307_v49 = vpop.permute.xlu0 %306 }
  0x80   :  { %v309_v50 = vperm.slane %v307_v49, 0 }
  0x9e   :  { %v111_v24 = vpop.f32.mrf.mxu0 }
  0x9f   :  { %v112_v25 = vadd.f32 %v459_v23, %v111_v24 }
  0xa1   :  { %v116_v26 = vmul.f32 0.2, %v112_v25  ;;  %vm115_vm0 = vcmp.ge.f32.partialorder %v112_v25, 0.0 }
  0xa3   :  { %v117_v27 = vsel %vm115_vm0, %v112_v25, %v116_v26 }
  0xa4   :  { %v118_v28 = vpack.c.bf16 %v117_v27, %v117_v27 }
  0xa6   :  { %v113_v29 = vpop.f32.mrf.mxu0  ;;  %195 = vmatmul.bf16.vlgmr.msra.gmra.mxu1 %v118_v28 }
 0x123   :  { %v196_v33 = vpop.f32.mrf.mxu1 }
 0x124   :  { %v197_v34 = vadd.f32 %v460_v32, %v196_v33 }
 0x126   :  { %v201_v35 = vmul.f32 0.2, %v197_v34  ;;  %vm200_vm1 = vcmp.ge.f32.partialorder %v197_v34, 0.0 }
 0x128   :  { %v202_v36 = vsel %vm200_vm1, %v197_v34, %v201_v35 }
 0x129   :  { %v203_v37 = vpack.c.bf16 %v202_v36, %v202_v36 }
 0x12b   :  { %v198_v38 = vpop.f32.mrf.mxu1  ;;  %280 = vmatmul.bf16.vlgmr.msra.gmra.mxu2 %v203_v37 }
 0x1ae   :  { %v281_v42 = vpop.f32.mrf.mxu2 }
 0x1af   :  { %v282_v43 = vadd.f32 %v461_v41, %v281_v42 }
 0x1b1   :  { %vm285_vm2 = vcmp.ge.f32.partialorder %v282_v43, 0.0  ;;  %v286_v44 = vmul.f32 0.2, %v282_v43 }
 0x1b3   :  { %v287_v45 = vsel %vm285_vm2, %v282_v43, %v286_v44 }
 0x1b4   :  { %v289_v46 = vpack.c.bf16 %v287_v45, %v287_v45 }
 0x1b6   :  { %v283_v47 = vpop.f32.mrf.mxu2  ;;  %297 = vmatpush.bf16.xpose.msra.mxu3 %v289_v46 }
 0x1bd   :  { %298 = vmatmul.bf16.vlgmr.msra.gmra.mxu3 %v288_v48 }
 0x240   :  { %v299_v51 = vpop.f32.mrf.mxu3 }
 0x241   :  { %v310_v52 = vadd.f32 %v309_v50, %v299_v51 }
 0x243   :  { %v432_v53 = vmul.f32 -1.442695, %v310_v52 }
 0x245   :  { %462 = vpow2.f32 %v432_v53 }
 0x248   :  { %v301_v54 = vpop.f32.mrf.mxu3 }
 0x24b   :  { %v463_v55 = vpop.eup %462 }
 0x24c   :  { %v314_v56 = vadd.f32 1.0, %v463_v55 }
 0x24e   :  { %464 = vrcp.f32 %v314_v56  ;;  %v326_v60 = vand.u32 2147483648, %v314_v56  ;;  %v324_v62 = vand.u32 2147483647, %v314_v56  ;;  %vm320_vm4 = vweird.f32 %v314_v56 }
 0x250   :  { %v327_v0 = vor.u32 1.1754944e-38, %v326_v60  ;;  %vm325_vm7 = vcmp.eq.f32.partialorder %v324_v62, 8.507059e+37 }
 0x254   :  { %v465_v57 = vpop.eup %464 }
 0x255   :  { %v316_v58 = vmul.f32 %v465_v57, %v314_v56  ;;  %vm321_vm3 = vweird.f32 %v465_v57 }
 0x256   :  { %vm322_vm5 = vmor %vm320_vm4, %vm321_vm3 }
 0x257   :  { %v317_v59 = vsub.f32 1.0, %v316_v58 }
 0x259   :  { %v318_v61 = vmul.f32 %v465_v57, %v317_v59 }
 0x25b   :  { %v319_v63 = vadd.f32 %v465_v57, %v318_v61 }
 0x25d   :  { %v323_v1 = vsel %vm322_vm5, %v465_v57, %v319_v63 }
 0x25e   :  { %v328_v2 = vsel %vm325_vm7, %v327_v0, %v323_v1 }
 0x25f   :  { %331 = vst.msk [vmem:[%s619_s9] sm:$0x1] %vm330_vm6, %v328_v2 }

</bundles_post_ra>
